<compile_context>
chip_gen: v6e
topology: v6e:2x2x1
jax: 0.10.0
libtpu: 0.0.40
codegen_flags: <defaults>
</compile_context>

<pallas_src>
import jax
import jax.numpy as jnp
from jax.experimental import pallas as pl
from jax.experimental.pallas import tpu as pltpu

_LANES = 128


# ---------------------------------------------------------------------------
# Gradient reversal (identity forward, negated gradient backward).
# ---------------------------------------------------------------------------
@jax.custom_vjp
def grad_reverse(x):
    return x


def _grad_reverse_fwd(x):
    return x, None


def _grad_reverse_bwd(_, g):
    return (-g,)


grad_reverse.defvjp(_grad_reverse_fwd, _grad_reverse_bwd)


# ---------------------------------------------------------------------------
# Pallas kernel: elementwise weight * points on a (block_rows, 128) tile.
# ---------------------------------------------------------------------------
def _adaptive_weight_kernel(w_ref, p_ref, o_ref):
    o_ref[...] = w_ref[...] * p_ref[...]


def _pick_block_rows(rows, max_block_rows):
    """Largest sublane-aligned block; keep >= 2 grid steps for big inputs."""
    block_rows = min(rows, max_block_rows)
    if block_rows != rows:
        # Not the full extent: must be a multiple of 8 sublanes.
        block_rows = max(8, (block_rows // 8) * 8)
    elif rows >= 1024:
        # Single huge block would serialize onto one TensorCore on v7x;
        # split in two (still >= 512 rows, near the HBM-roofline knee).
        block_rows = ((pl.cdiv(rows, 2) + 7) // 8) * 8
    return block_rows


def adaptive_weight_forward(weight, points, *, max_block_rows=1024,
                            alias_points_to_output=True):
    """weight: (n,), points: (n,) -> (n,) == weight * points."""
    assert weight.shape == points.shape, "weight/points must both have shape (n,)"
    n = weight.shape[0]

    out_dtype = jnp.result_type(weight.dtype, points.dtype)
    weight = weight.astype(out_dtype)
    points = points.astype(out_dtype)

    # View the flat vectors as (rows, 128) so the last dim maps to the lane
    # axis.  When n is a multiple of 128 this reshape is free (no copy); only
    # a ragged tail (< 128 elements) forces a pad copy.
    rem = n % _LANES
    n_pad = n if rem == 0 else n + (_LANES - rem)
    if n_pad != n:
        weight = jnp.pad(weight, (0, n_pad - n))
        points = jnp.pad(points, (0, n_pad - n))
    rows = n_pad // _LANES
    w2d = weight.reshape(rows, _LANES)
    p2d = points.reshape(rows, _LANES)

    block_rows = _pick_block_rows(rows, max_block_rows)
    grid = (pl.cdiv(rows, block_rows),)
    spec = pl.BlockSpec((block_rows, _LANES), lambda i: (i, 0))

    out2d = pl.pallas_call(
        _adaptive_weight_kernel,
        out_shape=jax.ShapeDtypeStruct((rows, _LANES), out_dtype),
        grid=grid,
        in_specs=[spec, spec],
        out_specs=spec,
        # Write the product over `points` storage when the caller is done
        # with it (saves one full n-sized HBM stream on this mem-bound op).
        input_output_aliases={1: 0} if alias_points_to_output else {},
        compiler_params=pltpu.CompilerParams(
            dimension_semantics=("parallel",)
        ),
    )(w2d, p2d)

    out = out2d.reshape(n_pad)
    if n_pad != n:
        out = out[:n]
    return out


class AdaptiveWeightLayer:
    """JAX/Pallas port of torchphysics AdaptiveWeightLayer."""

    def __init__(self, n, dtype=jnp.float32):
        # torch.nn.Parameter(torch.ones(n)) — deterministic init.
        self.weight = jnp.ones((n,), dtype=dtype)

    def __call__(self, points):
        w = grad_reverse(self.weight)
        return adaptive_weight_forward(w, points)


if __name__ == "__main__":
    n = 1024  # number of sampled points per batch (small demo shape)
    key = jax.random.PRNGKey(0)
    points = jax.random.normal(key, (n,), dtype=jnp.float32)

    layer = AdaptiveWeightLayer(n)

    # Compute the reference BEFORE the kernel call since the kernel may alias
    # `points` storage into the output buffer.
    ref = layer.weight * points

    out = layer(points)
    out = jax.block_until_ready(out)

    assert out.shape == (n,)
    assert jnp.allclose(out, ref, atol=1e-6), "mismatch vs reference"

    print("KERNEL_OK")
</pallas_src>

<mosaic_0001>
module attributes {stable_mosaic.version = 11 : i64} {
  func.func @_adaptive_weight_kernel(%arg0: i32, %arg1: memref<8x128xf32, #tpu.memory_space<vmem>>, %arg2: memref<8x128xf32, #tpu.memory_space<vmem>>, %arg3: memref<8x128xf32, #tpu.memory_space<vmem>>) attributes {dimension_semantics = [#tpu.dimension_semantics<parallel>], iteration_bounds = array<i64: 1>, scalar_prefetch = 0 : i64, scratch_operands = 0 : i64, tpu.core_type = #tpu.core_type<tc>, window_params = [{transform_indices = @transform_0, window_bounds = array<i64: 8, 128>}, {transform_indices = @transform_1, window_bounds = array<i64: 8, 128>}, {transform_indices = @transform_2, window_bounds = array<i64: 8, 128>}]} {
    %c0 = arith.constant 0 : index
    %c0_0 = arith.constant 0 : index
    %0 = vector.load %arg1[%c0, %c0_0] : memref<8x128xf32, #tpu.memory_space<vmem>>, vector<8x128xf32>
    %c0_1 = arith.constant 0 : index
    %c0_2 = arith.constant 0 : index
    %1 = vector.load %arg2[%c0_1, %c0_2] : memref<8x128xf32, #tpu.memory_space<vmem>>, vector<8x128xf32>
    %2 = arith.mulf %0, %1 : vector<8x128xf32>
    %c0_3 = arith.constant 0 : index
    %c0_4 = arith.constant 0 : index
    %3 = vector.load %arg3[%c0_3, %c0_4] : memref<8x128xf32, #tpu.memory_space<vmem>>, vector<8x128xf32>
    tpu.vector_store %arg3[%c0_3, %c0_4], %2 {strides = array<i32>} : memref<8x128xf32, #tpu.memory_space<vmem>>, vector<8x128xf32>,
    return
  }
  func.func @transform_0(%arg0: i32) -> (i32, i32) {
    %c0_i32 = arith.constant 0 : i32
    %c0_i32_0 = arith.constant 0 : i32
    return %arg0, %c0_i32 : i32, i32
  }
  func.func @transform_1(%arg0: i32) -> (i32, i32) {
    %c0_i32 = arith.constant 0 : i32
    %c0_i32_0 = arith.constant 0 : i32
    return %arg0, %c0_i32 : i32, i32
  }
  func.func @transform_2(%arg0: i32) -> (i32, i32) {
    %c0_i32 = arith.constant 0 : i32
    %c0_i32_0 = arith.constant 0 : i32
    return %arg0, %c0_i32 : i32, i32
  }
}

</mosaic_0001>

<bundles_post_ra>
// kernel: tpu_custom_call.1
= control target key start
LH: loop header
LB: loop body
LE: loop exit
PB: predicated region body
PF: predicated region fallthrough
CT: control target
= control target key end

     0   :  { %7 = vsyncpa [#allocation3], 0  ;;  %s115_s0 = inlined_call_operand.vmem [shape: f32[8,128], index: 0, kind: input, shape index: {}]   ;;  %s116_s1 = inlined_call_operand.hbm [shape: f32[8,128], index: 1, kind: input, shape index: {}, may-alias: {1,2}]   ;;  %s117_s2 = inlined_call_operand.hbm [shape: f32[8,128], index: 2, kind: output, shape index: {}, may-alias: {1,2}]  }
   0x1   :  { %8 = vsyncpa [#allocation4], 0  ;;  %s89_s9 = smov [#allocation2]  }
   0x2   :  { %s17_s10 = sshll.u32 %s89_s9, 4  ;;  %s18_s10 = int_to_ptr.vmem [resolvable:$true] %s17_s10 }
   0x3   :  { %s53_s11 = scalar_lea.vmem %s18_s10, 128  ;;  %p58_p1 = scmp.lt.s32.totalorder %s18_s10, %s18_s10 }
   0x4   :  { %p54_p0 = scmp.ne.s32.totalorder %s18_s10, %s53_s11  ;;  %p59_p2 = scmp.lt.s32.totalorder %s53_s11, %s53_s11 }
   0x6   :  { %p60_p3 = por %p59_p2, %p58_p1 }
   0x8   :  { %p61_p4 = pnand %p60_p3, %p54_p0 }
   0xa   :  { %64 = shalt.err (!%p61_p4)
}
   0xb   :  { %20 = dma.hbm_to_vmem [thread:$0]  %s116_s1, 128, %s18_s10, [#allocation3]  }
   0xc   :  { %85 = dma.done.wait [#allocation3], 128  }
   0xd   :  { %86 = vsyncadd [#allocation3], 4294967168  ;;  %s90_s14 = smov [#allocation5]   ;;  %v24_v0 = vld [vmem:[%s115_s0] sm:$0xff] }
   0xe   :  { %s34_s15 = sshll.u32 %s90_s14, 4  ;;  %v25_v1 = vld [vmem:[#allocation2] sm:$0xff]  ;;  %s35_s15 = int_to_ptr.vmem [resolvable:$true] %s34_s15 }
   0xf   :  { %v26_v2 = vmul.f32 %v25_v1, %v24_v0  ;;  %s65_s18 = scalar_lea.vmem %s35_s15, 128  ;;  %p70_p6 = scmp.lt.s32.totalorder %s35_s15, %s35_s15 }
  0x10   :  { %p66_p5 = scmp.ne.s32.totalorder %s35_s15, %s65_s18  ;;  %p71_p7 = scmp.lt.s32.totalorder %s65_s18, %s65_s18 }
  0x11   :  { %27 = vst [vmem:[#allocation5] sm:$0xff] %v26_v2 }
  0x12   :  { %p72_p8 = por %p71_p7, %p70_p6 }
  0x14   :  { %p73_p9 = pnand %p72_p8, %p66_p5 }
  0x16   :  { %76 = shalt.err (!%p73_p9)
}
  0x17   :  { %37 = dma.vmem_to_hbm [thread:$0]  %s35_s15, 128, %s117_s2, [#allocation4]  }
  0x18   :  { %87 = dma.done.wait [#allocation4], 128  }
  0x19   :  { %88 = vsyncadd [#allocation4], 4294967168 }
  0x1a   :  { %41 = vsyncpa [#allocation3], 1 }
  0x1b   :  { %42 = vsyncpa [#allocation4], 1 }

</bundles_post_ra>
